<compile_context>
chip_gen: v7x
topology: tpu7x:2x2x1
jax: 0.10.0
libtpu: 0.0.40
codegen_flags: <defaults>
</compile_context>

<pallas_src>
import jax
import jax.numpy as jnp
from jax.experimental import pallas as pl
from jax.experimental.pallas import tpu as pltpu

_LANE = 128
# ~2 MiB per buffer; with default double-buffering the in+out working set is
# ~8 MiB -- safely inside the scoped-VMEM defaults on all current generations.
_TARGET_BLOCK_BYTES = 2 << 20
# Below this total size a fused XLA elementwise op beats the pallas_call
# launch + single grid step.
_SMALL_FALLBACK_BYTES = 1 << 20


def _round_up(a: int, m: int) -> int:
    return ((a + m - 1) // m) * m


def _mish_kernel(x_ref, o_ref):
    x = x_ref[...].astype(jnp.float32)
    # tanh(softplus(x)) rewritten so only exp + reciprocal hit the EUP
    # (instead of exp + log1p + tanh = 3 transcendentals):
    #   z = exp(-|x|)
    #   x >= 0:  tanh(softplus(x)) = (1 + 2z) / (1 + 2z + 2z^2)
    #   x <  0:  tanh(softplus(x)) = (2z + z^2) / (2 + 2z + z^2)
    z = jnp.exp(-jnp.abs(x))                       # 1 EUP transcendental
    zz = z * z
    pos = x >= 0.0
    num = 2.0 * z + jnp.where(pos, 1.0, zz)
    den = num + jnp.where(pos, 2.0 * zz, 2.0)      # den in (1, 5]
    r = pl.reciprocal(den, approx=True)            # EUP vrcp (cheap slot)
    r = r * (2.0 - den * r)                        # single Newton step (VPU)
    o_ref[...] = (x * num * r).astype(o_ref.dtype)


def _mish_slab(slab: jax.Array) -> jax.Array:
    """Mish on a lane-dense (rows, 128) slab."""
    rows, lane = slab.shape
    assert lane == _LANE
    itemsize = jnp.dtype(slab.dtype).itemsize
    # dtype-aware sublane granularity: 8 rows for f32, 16 for bf16, 32 for int8/fp8
    sublane_mult = max(8, 32 // itemsize)

    # Byte-budgeted tile: ~2 MiB per buffer regardless of dtype.
    target_rows = max(
        sublane_mult,
        (_TARGET_BLOCK_BYTES // (_LANE * itemsize)) // sublane_mult * sublane_mult,
    )
    if rows <= sublane_mult:
        block_rows = rows                      # full extent (always legal)
    else:
        rows_padded = _round_up(rows, sublane_mult)
        block_rows = min(target_rows, rows_padded)
        # Keep >= 2 grid steps when possible so v7x's two TensorCores both
        # get work on the "parallel" axis.
        if block_rows >= rows_padded and rows_padded >= 2 * sublane_mult:
            block_rows = _round_up(rows_padded // 2, sublane_mult)

    grid = (pl.cdiv(rows, block_rows),)

    n_elems = rows * _LANE
    cost = pl.CostEstimate(
        flops=13 * n_elems,
        transcendentals=2 * n_elems,
        bytes_accessed=2 * n_elems * itemsize,
    )

    return pl.pallas_call(
        _mish_kernel,
        out_shape=jax.ShapeDtypeStruct((rows, _LANE), slab.dtype),
        grid=grid,
        in_specs=[pl.BlockSpec((block_rows, _LANE), lambda i: (i, 0))],
        out_specs=pl.BlockSpec((block_rows, _LANE), lambda i: (i, 0)),
        compiler_params=pltpu.CompilerParams(
            dimension_semantics=("parallel",),
        ),
        cost_estimate=cost,
    )(slab)


def _mish_ref(x: jax.Array) -> jax.Array:
    xf = x.astype(jnp.float32)
    return (xf * jnp.tanh(jax.nn.softplus(xf))).astype(x.dtype)


def mish(x: jax.Array, *, force_pallas: bool = False) -> jax.Array:
    """Applies Mish elementwise. Accepts any shape / float dtype."""
    orig_shape = x.shape
    n = x.size
    if n == 0:
        return x
    itemsize = jnp.dtype(x.dtype).itemsize

    if n % _LANE != 0:
        # Rare lane-unaligned sizes: a single fused XLA elementwise pass is
        # one HBM read + one write -- cheaper than kernel + stitch traffic.
        return _mish_ref(x)

    if not force_pallas and n * itemsize < _SMALL_FALLBACK_BYTES:
        # Tiny tensors: pallas_call launch overhead dominates.
        return _mish_ref(x)

    # Common case: free reshape to a lane-dense slab -- one streaming HBM
    # pass, no pad / slice copies. Ragged row tail is handled by Pallas's
    # masked edge blocks (pl.cdiv grid).
    out = _mish_slab(x.reshape(n // _LANE, _LANE))
    return out.reshape(orig_shape)


if __name__ == "__main__":
    key = jax.random.PRNGKey(0)
    # NCHW input, consistent with a conv-style module: batch=2, C=4, H=W=16
    x = jax.random.normal(key, (2, 4, 16, 16), dtype=jnp.float32) * 3.0

    # Force the Pallas path so the kernel is exercised even at this small
    # demo size (production calls would take the fused-XLA fallback here).
    y = jax.block_until_ready(mish(x, force_pallas=True))

    # reference check in plain JAX
    ref = x * jnp.tanh(jax.nn.softplus(x))
    assert y.shape == x.shape and y.dtype == x.dtype
    assert jnp.max(jnp.abs(y - ref)) < 1e-4, float(jnp.max(jnp.abs(y - ref)))

    # also sanity-check the small-size / fallback path
    y_small = jax.block_until_ready(mish(x))
    assert jnp.max(jnp.abs(y_small - ref)) < 1e-4

    print("KERNEL_OK")
</pallas_src>

<mosaic_0001>
module attributes {stable_mosaic.version = 11 : i64} {
  func.func @_mish_kernel(%arg0: i32, %arg1: memref<8x128xf32, #tpu.memory_space<vmem>>, %arg2: memref<8x128xf32, #tpu.memory_space<vmem>>) attributes {dimension_semantics = [#tpu.dimension_semantics<parallel>], iteration_bounds = array<i64: 2>, scalar_prefetch = 0 : i64, scratch_operands = 0 : i64, tpu.core_type = #tpu.core_type<tc>, window_params = [{transform_indices = @transform_0, window_bounds = array<i64: 8, 128>}, {transform_indices = @transform_1, window_bounds = array<i64: 8, 128>}]} {
    %c0 = arith.constant 0 : index
    %c0_0 = arith.constant 0 : index
    %0 = vector.load %arg1[%c0, %c0_0] : memref<8x128xf32, #tpu.memory_space<vmem>>, vector<8x128xf32>
    %1 = math.absf %0 : vector<8x128xf32>
    %cst = arith.constant 0.000000e+00 : f32
    %2 = vector.broadcast %cst : f32 to vector<8x128xf32>
    %3 = arith.subf %2, %1 : vector<8x128xf32>
    %4 = math.exp %3 : vector<8x128xf32>
    %5 = arith.mulf %4, %4 : vector<8x128xf32>
    %cst_1 = arith.constant 0.000000e+00 : f32
    %6 = vector.broadcast %cst_1 : f32 to vector<8x128xf32>
    %7 = arith.cmpf oge, %0, %6 : vector<8x128xf32>
    %cst_2 = arith.constant 2.000000e+00 : f32
    %8 = vector.broadcast %cst_2 : f32 to vector<8x128xf32>
    %9 = arith.mulf %8, %4 : vector<8x128xf32>
    %cst_3 = arith.constant 1.000000e+00 : f32
    %10 = vector.broadcast %cst_3 : f32 to vector<8x128xf32>
    %11 = arith.select %7, %10, %5 : vector<8x128xi1>, vector<8x128xf32>
    %12 = arith.addf %9, %11 : vector<8x128xf32>
    %cst_4 = arith.constant 2.000000e+00 : f32
    %13 = vector.broadcast %cst_4 : f32 to vector<8x128xf32>
    %14 = arith.mulf %13, %5 : vector<8x128xf32>
    %cst_5 = arith.constant 2.000000e+00 : f32
    %15 = vector.broadcast %cst_5 : f32 to vector<8x128xf32>
    %16 = arith.select %7, %14, %15 : vector<8x128xi1>, vector<8x128xf32>
    %17 = arith.addf %12, %16 : vector<8x128xf32>
    %18 = tpu.reciprocal %17 {approx = true} : vector<8x128xf32> -> vector<8x128xf32>
    %19 = arith.mulf %17, %18 : vector<8x128xf32>
    %cst_6 = arith.constant 2.000000e+00 : f32
    %20 = vector.broadcast %cst_6 : f32 to vector<8x128xf32>
    %21 = arith.subf %20, %19 : vector<8x128xf32>
    %22 = arith.mulf %18, %21 : vector<8x128xf32>
    %23 = arith.mulf %0, %12 : vector<8x128xf32>
    %24 = arith.mulf %23, %22 : vector<8x128xf32>
    %c0_7 = arith.constant 0 : index
    %c0_8 = arith.constant 0 : index
    %25 = vector.load %arg2[%c0_7, %c0_8] : memref<8x128xf32, #tpu.memory_space<vmem>>, vector<8x128xf32>
    tpu.vector_store %arg2[%c0_7, %c0_8], %24 {strides = array<i32>} : memref<8x128xf32, #tpu.memory_space<vmem>>, vector<8x128xf32>,
    return
  }
  func.func @transform_0(%arg0: i32) -> (i32, i32) {
    %c0_i32 = arith.constant 0 : i32
    %c0_i32_0 = arith.constant 0 : i32
    return %arg0, %c0_i32 : i32, i32
  }
  func.func @transform_1(%arg0: i32) -> (i32, i32) {
    %c0_i32 = arith.constant 0 : i32
    %c0_i32_0 = arith.constant 0 : i32
    return %arg0, %c0_i32 : i32, i32
  }
}

</mosaic_0001>

<bundles_post_ra>
// kernel: tpu_custom_call.1
= control target key start
LH: loop header
LB: loop body
LE: loop exit
PB: predicated region body
PF: predicated region fallthrough
CT: control target
= control target key end

     0   :  { %6 = vsyncpa [#allocation3], 0  ;;  %s569_s0 = inlined_call_operand.hbm [shape: f32[16,128], index: 0, kind: input, shape index: {}]   ;;  %s570_s1 = inlined_call_operand.hbm [shape: f32[16,128], index: 1, kind: output, shape index: {}]  }
   0x1   :  { %8 = vsyncpa [#allocation3 + $0x1], 0 }
   0x2   :  { %9 = vsyncpa [#allocation4], 0 }
   0x3   :  { %11 = vsyncpa [#allocation4 + $0x1], 0  ;;  %s408_s6 = smov 0   ;;  %s410_s7 = smov 0  }
   0x4   :  { %s412_s8 = smov 0   ;;  %s414_s9 = smov 0  }
   0x5 LB: > { %s429_s10 = sadd.s32 4294967295, %s394_s9   ;;  %s236_s11 = sadd.s32 4294967294, %s394_s9   ;;  %s394_s9 = sphi %s414_s9, %s585_s9   ;;  %s390_s8 = sphi %s412_s8, %s584_s8   ;;  %s386_s7 = sphi %s410_s7, %s583_s7   ;;  %s382_s6 = sphi %s408_s6, %s582_s6  }
   0x6   : > { %s433_s12 = sadd.s32 1, %s394_s9   ;;  %s24_s13 = sadd.s32 1, %s390_s8 }
   0x7   : > { %s21_s14 = ssub.s32 %s394_s9, %s433_s12  ;;  %p31_p0 = scmp.ne.s32.totalorder %s390_s8, %s386_s7 }
   0x8   : > { %p22_p1 = scmp.eq.s32.totalorder %s21_s14, 0  ;;  %p32_p2 = scmp.eq.s32.totalorder %s394_s9, 0 }
   0x9   : > { %p37_p3 = scmp.ne.s32.totalorder %s386_s7, %s382_s6  ;;  %p38_p4 = scmp.eq.s32.totalorder %s429_s10, 0 }
   0xa   : > { %s445_s15 = scalar_select %p22_p1, %s390_s8, %s24_s13  }
   0xb   : > { %p447_p5 = por %p32_p2, %p31_p0  ;;  %p451_p6 = por %p38_p4, %p37_p3 }
   0xc   : > { %p61_p7 = scmp.eq.s32.totalorder %s429_s10, 1  ;;  %p67_p8 = scmp.eq.s32.totalorder %s236_s11, 1 }
   0xd   : > { %p260_p10 = scmp.lt.s32.totalorder %s394_s9, 2  ;;  %s87_s20 = sand.u32 1, %s390_s8  }
   0xe   : > { %p458_p11 = por %p61_p7, %p31_p0  ;;  %p462_p12 = por %p67_p8, %p37_p3 }
   0xf   : > { %s240_s21 = sshll.u32 %s394_s9, 7  ;;  %s239_s22 = sshll.u32 %s87_s20, 3 }
  0x10   : > { %s574_s18 = scalar_select %p458_p11, 1, 0 }
  0x11   : > { %s575_s19 = scalar_select %p462_p12, 1, 0 }
  0x12   : > { %s471_s25 = scalar_lea.hbm %s569_s0, %s240_s21  ;;  %s91_s26 = scalar_lea.vmem [#allocation2], %s239_s22 }
  0x13   : > { %s98_s27 = sshll.u32 %s91_s26, 4  ;;  %p475_p13 = pnand %p260_p10, %p447_p5  ;;  %s479_s27 = int_to_ptr.vmem [resolvable:$true] %s98_s27 }
  0x14   : > { %s88_s29 = scalar_lea.sflag [#allocation3], %s87_s20  ;;  %s298_s30 = scalar_lea.hbm %s471_s25, 128 }
  0x15   : > { %p299_p2 = scmp.ne.s32.totalorder %s471_s25, %s298_s30  ;;  %p300_p3 = pneg %p475_p13 }
  0x16   : > { %s303_s4 = scalar_lea.hbm %s569_s0, 256  ;;  %p304_p5 = scmp.lt.u32.totalorder %s471_s25, %s569_s0 }
  0x17   : > { %p301_p4 = pnand %p300_p3, %p299_p2  ;;  %p305_p8 = scmp.lt.u32.totalorder %s303_s4, %s298_s30 }
  0x18   : > { %p307_p9 = scmp.lt.u32.totalorder %s298_s30, %s471_s25 }
  0x19   : > { %p302_p7 = pneg %p301_p4  ;;  %p306_p10 = por %p305_p8, %p304_p5 }
  0x1b   : > { %p308_p0 = por %p307_p9, %p306_p10 }
  0x1d   : > { %p309_p1 = pnand %p308_p0, %p302_p7 }
  0x1f   : > { %312 = shalt.err (!%p309_p1)
}
  0x20   : > { %s313_s13 = scalar_lea.vmem %s479_s27, 128  ;;  %s396_s14 = smov [#allocation2]  }
  0x21   : > { %p314_p2 = scmp.ne.s32.totalorder %s479_s27, %s313_s13  ;;  %s318_s16 = sshll.u32 %s396_s14, 4  ;;  %s319_s16 = int_to_ptr.vmem [resolvable:$false] %s318_s16 }
  0x22   : > { %s320_s20 = scalar_lea.vmem %s319_s16, 256  ;;  %p321_p11 = scmp.lt.s32.totalorder %s479_s27, %s319_s16 }
  0x23   : > { %p316_p4 = pnand %p314_p2, %p300_p3  ;;  %p322_p5 = scmp.lt.s32.totalorder %s320_s20, %s313_s13 }
  0x25   : > { %p317_p12 = pneg %p316_p4  ;;  %p323_p8 = por %p322_p5, %p321_p11 }
  0x27   : > { %p324_p9 = pnand %p323_p8, %p317_p12 }
  0x29   : > { %327 = shalt.err (!%p324_p9)
}
  0x2a   : > { %255 = dma.hbm_to_vmem [thread:$0]  (!%p475_p13), %s471_s25, 128, %s479_s27, %s88_s29  }
  0x2b   : > { %p577_p0 = scmp.lt.s32.totalorder %s394_s9, 3  ;;  %p578_p1 = scmp.ge.s32.totalorder %s394_s9, 1 }
  0x2d   : > { %p104_p3 = pnand %p578_p1, %p577_p0 }
  0x2e   : > { %s513_s21 = sand.u32 (!%p104_p3), 1, %s386_s7  }
  0x2f   : > { %107 = sbr.rel (%p104_p3) target bundleno = 113 (0x71), region = 24  ;;  %s242_s22 = sshll.u32 (!%p104_p3), %s513_s21, 3 }
  0x30   : > { %s110_s23 = scalar_lea.sflag (!%p104_p3), [#allocation3], %s513_s21  ;;  %s113_s24 = scalar_lea.vmem (!%p104_p3), [#allocation2], %s242_s22 }
  0x36   : > { %373 = dma.done.wait (%p451_p6), %s110_s23, 128  }
  0x37   : > { %375 = vsyncadd (%p451_p6), %s110_s23, 4294967168  ;;  %v132_v0 = vld [vmem:[%s113_s24] sm:$0xff]  ;;  %s131_s17 = scalar_lea.vmem [#allocation5], %s242_s22  ;;  %s245_s26 = sshll.u32 %s429_s10, 7 }
  0x38   : > { %v133_v1 = vand.u32 2147483647, %v132_v0  ;;  %vm138_vm0 = vcmp.ge.f32.partialorder %v132_v0, 0.0  ;;  %s166_s25 = sshll.u32 %s131_s17, 4  ;;  %s527_s29 = scalar_lea.hbm %s570_s1, %s245_s26  ;;  %s522_s25 = int_to_ptr.vmem [resolvable:$true] %s166_s25 }
  0x39   : > { %s153_s30 = scalar_lea.sflag [#allocation4], %s513_s21  ;;  %s328_s2 = scalar_lea.vmem %s522_s25, 128 }
  0x3a   : > { %v134_v2 = vsub.f32 0.0, %v133_v1  ;;  %p329_p6 = scmp.ne.s32.totalorder %s522_s25, %s328_s2  ;;  %p579_p11 = scmp.ne.s32.totalorder %s574_s18, 0 }
  0x3b   : > { %s397_s10 = smov [#allocation5]  }
  0x3c   : > { %v135_v3 = vmul.f32 1.442695, %v134_v2  ;;  %p330_p12 = pnand %p329_p6, %p579_p11  ;;  %s332_s3 = sshll.u32 %s397_s10, 4  ;;  %s333_s3 = int_to_ptr.vmem [resolvable:$false] %s332_s3 }
  0x3d   : > { %s334_s4 = scalar_lea.vmem %s333_s3, 256  ;;  %p335_p7 = scmp.lt.s32.totalorder %s522_s25, %s333_s3 }
  0x3e   : > { %294 = vpow2.f32 %v135_v3  ;;  %p331_p13 = pneg %p330_p12  ;;  %p336_p10 = scmp.lt.s32.totalorder %s334_s4, %s328_s2 }
  0x40   : > { %p337_p2 = por %p336_p10, %p335_p7 }
  0x42   : > { %p338_p4 = pnand %p337_p2, %p331_p13 }
  0x48   : > { %v295_v4 = vpop.eup %294 }
  0x49   : > { %v137_v5 = vmul.f32 %v295_v4, %v295_v4  ;;  %v139_v6 = vmul.f32 2.0, %v295_v4 }
  0x4b   : > { %v140_v7 = vsel %vm138_vm0, 1.0, %v137_v5  ;;  %v142_v8 = vmul.f32 2.0, %v137_v5 }
  0x4c   : > { %v141_v9 = vadd.f32 %v140_v7, %v139_v6 }
  0x4d   : > { %v143_v10 = vsel %vm138_vm0, %v142_v8, 2.0 }
  0x4e   : > { %v144_v11 = vadd.f32 %v143_v10, %v141_v9  ;;  %v149_v15 = vmul.f32 %v141_v9, %v132_v0 }
  0x50   : > { %296 = vrcp.f32 %v144_v11 }
  0x5a   : > { %v297_v12 = vpop.eup %296 }
  0x5b   : > { %v146_v13 = vmul.f32 %v297_v12, %v144_v11 }
  0x5d   : > { %v147_v14 = vsub.f32 2.0, %v146_v13 }
  0x5f   : > { %v148_v16 = vmul.f32 %v297_v12, %v147_v14 }
  0x61   : > { %v150_v17 = vmul.f32 %v149_v15, %v148_v16 }
  0x63   : > { %151 = vst [vmem:[%s131_s17] sm:$0xff] %v150_v17 }
  0x64   : > { %341 = shalt.err (!%p338_p4)
}
  0x65   : > { %s342_s5 = scalar_lea.hbm %s527_s29, 128  ;;  %s346_s14 = scalar_lea.hbm %s570_s1, 256 }
  0x66   : > { %p343_p5 = scmp.ne.s32.totalorder %s527_s29, %s342_s5  ;;  %p347_p0 = scmp.lt.u32.totalorder %s527_s29, %s570_s1 }
  0x67   : > { %p348_p1 = scmp.lt.u32.totalorder %s346_s14, %s342_s5  ;;  %p350_p6 = scmp.lt.u32.totalorder %s342_s5, %s527_s29 }
  0x68   : > { %p344_p8 = pnand %p343_p5, %p579_p11 }
  0x69   : > { %p349_p3 = por %p348_p1, %p347_p0 }
  0x6a   : > { %p345_p9 = pneg %p344_p8 }
  0x6b   : > { %p351_p12 = por %p350_p6, %p349_p3 }
  0x6d   : > { %p352_p13 = pnand %p351_p12, %p345_p9 }
  0x6f   : > { %355 = shalt.err (!%p352_p13)
}
  0x70   : > { %250 = dma.vmem_to_hbm [thread:$0]  (%p579_p11), %s522_s25, 128, %s527_s29, %s153_s30  }
  0x71 PF: > { %s178_s21 = sand.u32 1, %s382_s6   ;;  %p580_p7 = scmp.ne.s32.totalorder %s575_s19, 0 }
  0x72   : > { %p581_p10 = scmp.ge.s32.totalorder %s394_s9, 2  ;;  %s179_s22 = scalar_lea.sflag [#allocation4], %s178_s21 }
  0x74   : > { %p257_p2 = pnand %p581_p10, %p580_p7 }
  0x76   : > { %377 = dma.done.wait (!%p257_p2), %s179_s22, 128  }
  0x77   : > { %379 = vsyncadd (!%p257_p2), %s179_s22, 4294967168  ;;  %p14_p4 = scmp.ge.s32.totalorder %s433_s12, 4   ;;  %s582_s6 = smov %s386_s7 }
  0x78   : > { %s583_s7 = smov %s390_s8  ;;  %s584_s8 = smov %s445_s15 }
  0x79   : > { %s585_s9 = smov %s433_s12  ;;  %16 = sbr.rel (!%p14_p4) target bundleno = 5 (0x5), region = 69 }
  0x80   :  { %184 = vsyncpa [#allocation3], 1 }
  0x81   :  { %186 = vsyncpa [#allocation3 + $0x1], 1 }
  0x82   :  { %187 = vsyncpa [#allocation4], 1 }
  0x83   :  { %189 = vsyncpa [#allocation4 + $0x1], 1 }

</bundles_post_ra>
